<compile_context>
chip_gen: v7x
topology: tpu7x:2x2x1
jax: 0.10.0
libtpu: 0.0.40
codegen_flags: <defaults>
</compile_context>

<pallas_src>
import functools

import jax
import jax.numpy as jnp
from jax import lax
from jax.experimental import pallas as pl
from jax.experimental.pallas import tpu as pltpu


def _round_up(x, m):
    return ((x + m - 1) // m) * m


def _bf16_vector_ok():
    """bf16 VPU/EUP exists on v6e/v7x but not on v5e and older generations."""
    try:
        kind = jax.devices()[0].device_kind.lower()
    except Exception:
        return False
    return not any(tag in kind for tag in ("v2", "v3", "v4", "v5"))


def dnn3_kernel(x_ref,
                w1_ref, b1_ref,
                w2_ref, b2_ref,
                w3_ref, b3_ref,
                w4_ref, b4_ref,
                o_ref, *, act_dtype, chunk):
    mm_dtype = w1_ref.dtype
    tb = x_ref.shape[0]
    n_chunks = tb // chunk                       # static trip count

    def body(c, carry):
        start = pl.multiple_of(c * chunk, chunk)
        # (chunk, dim) slice of x in its natural layout; cast to the MXU dtype
        # here (no wrapper-side transpose/cast HBM pass).
        xc = x_ref[pl.ds(start, chunk), :].astype(mm_dtype)

        # fc1: contract over `dim` on both operands -> lane-dense (50, chunk).
        h = lax.dot_general(w1_ref[...], xc, (((1,), (1,)), ((), ())),
                            preferred_element_type=jnp.float32)
        h = jnp.tanh((h + b1_ref[...]).astype(act_dtype)).astype(mm_dtype)

        # fc2 (50 -> 10) and fc3 (10 -> 5): small MXU matmuls, f32 accumulation.
        h = jnp.dot(w2_ref[...], h, preferred_element_type=jnp.float32)
        h = jnp.tanh((h + b2_ref[...]).astype(act_dtype)).astype(mm_dtype)

        h = jnp.dot(w3_ref[...], h, preferred_element_type=jnp.float32)
        h = jnp.tanh((h + b3_ref[...]).astype(act_dtype)).astype(jnp.float32)

        # fc4 (5 -> 1): VPU multiply + cross-sublane (XLU) reduce; result is
        # already lane-dense -> full-width store into the (1, tb) output slab.
        out = jnp.sum(h * w4_ref[...], axis=0, keepdims=True) + b4_ref[...]
        o_ref[:, pl.ds(start, chunk)] = out.astype(o_ref.dtype)
        return carry

    lax.fori_loop(0, n_chunks, body, 0, unroll=True)


def dnn3_forward(x, params, *, tb=None, chunk=256,
                 matmul_dtype=jnp.bfloat16, act_dtype=None):
    """x: (B, dim) float32.  params: PyTorch-layout weights (see init_params)."""
    B, dim = x.shape

    # ---- activation dtype: bf16 only where the VPU/EUP support it -------------
    if act_dtype is None:
        act_dtype = jnp.bfloat16 if _bf16_vector_ok() else jnp.float32
    elif act_dtype == jnp.bfloat16 and not _bf16_vector_ok():
        act_dtype = jnp.float32            # guard: no bf16 vector path on v5e

    # ---- batch tile: large (amortize ~0.35us/step); even >=2 tile count when
    #      the batch is big enough so both v7x TensorCores get equal work ------
    if tb is None:
        bp = _round_up(B, 128)
        if bp <= 256:
            tb = bp                                   # tiny batch: one tile
        elif bp <= 4096:
            tb = _round_up(bp // 2, 128)              # two equal tiles
        else:
            tb = 2048                                 # many large tiles
    assert tb % 128 == 0
    b_pad = _round_up(B, tb)
    num_tiles = b_pad // tb

    # in-kernel lane sub-chunk: bounds the vreg working set at large tb.
    chunk = min(chunk, tb)
    while tb % chunk:
        chunk -= 128
    assert chunk >= 128 and tb % chunk == 0

    # ---- operands: x stays in its natural (B, dim) f32 layout; only pad ------
    x_p = x if b_pad == B else jnp.pad(x, ((0, b_pad - B), (0, 0)))

    w1 = params["w1"].astype(matmul_dtype)     # (50, dim)
    w2 = params["w2"].astype(matmul_dtype)     # (10, 50)
    w3 = params["w3"].astype(matmul_dtype)     # (5, 10)
    w4 = params["w4"].astype(jnp.float32)      # (5, 1) column, used on the VPU
    b1, b2, b3, b4 = (params[f"b{i}"].astype(jnp.float32) for i in range(1, 5))

    def full_spec(arr):
        # tiny parameter tensors: one full-array block at a constant index so
        # they stay VMEM-resident and are not re-DMA'd across grid steps.
        return pl.BlockSpec(arr.shape, lambda i: (0, 0))

    param_bytes = sum(a.size * a.dtype.itemsize
                      for a in (w1, b1, w2, b2, w3, b3, w4, b4))
    cost = pl.CostEstimate(
        flops=2 * b_pad * (dim * 50 + 50 * 10 + 10 * 5 + 5),
        transcendentals=65 * b_pad,
        bytes_accessed=b_pad * dim * x_p.dtype.itemsize + b_pad * 4 + param_bytes)

    out_t = pl.pallas_call(
        functools.partial(dnn3_kernel, act_dtype=act_dtype, chunk=chunk),
        out_shape=jax.ShapeDtypeStruct((1, b_pad), jnp.float32),
        grid_spec=pltpu.PrefetchScalarGridSpec(
            num_scalar_prefetch=0,
            grid=(num_tiles,),
            in_specs=[
                pl.BlockSpec((tb, dim), lambda i: (i, 0)),   # x, natural layout
                full_spec(w1), full_spec(b1),
                full_spec(w2), full_spec(b2),
                full_spec(w3), full_spec(b3),
                full_spec(w4), full_spec(b4),
            ],
            out_specs=pl.BlockSpec((1, tb), lambda i: (0, i)),
        ),
        compiler_params=pltpu.CompilerParams(
            dimension_semantics=("parallel",)),
        cost_estimate=cost,
    )(x_p, w1, b1, w2, b2, w3, b3, w4, b4)

    # back to the PyTorch (B, 1) shape; drop batch padding.
    return out_t[0, :B].reshape(B, 1)


def init_params(dim, key):
    """PyTorch-default Linear init (uniform +/- 1/sqrt(fan_in)); weights kept
    in PyTorch's (out_features, in_features) layout, biases as (out, 1)
    columns.  fc4's weight is stored transposed as a (5, 1) column (VPU path)."""
    shapes = [(50, dim), (10, 50), (5, 10), (1, 5)]
    params = {}
    for idx, (fan_out, fan_in) in enumerate(shapes, start=1):
        key, kw, kb = jax.random.split(key, 3)
        bound = 1.0 / (fan_in ** 0.5)
        params[f"w{idx}"] = jax.random.uniform(
            kw, (fan_out, fan_in), jnp.float32, -bound, bound)
        params[f"b{idx}"] = jax.random.uniform(
            kb, (fan_out, 1), jnp.float32, -bound, bound)
    params["w4"] = params["w4"].T              # (1, 5) -> (5, 1)
    return params


def dnn3_reference(x, params, *, matmul_dtype=jnp.bfloat16,
                   act_dtype=jnp.float32):
    """Plain-JAX reference with the same operand precisions as the kernel."""
    xt = x.T.astype(matmul_dtype)
    h = jnp.dot(params["w1"].astype(matmul_dtype), xt,
                preferred_element_type=jnp.float32)
    h = jnp.tanh((h + params["b1"]).astype(act_dtype)).astype(matmul_dtype)
    h = jnp.dot(params["w2"].astype(matmul_dtype), h,
                preferred_element_type=jnp.float32)
    h = jnp.tanh((h + params["b2"]).astype(act_dtype)).astype(matmul_dtype)
    h = jnp.dot(params["w3"].astype(matmul_dtype), h,
                preferred_element_type=jnp.float32)
    h = jnp.tanh((h + params["b3"]).astype(act_dtype)).astype(jnp.float32)
    out = jnp.sum(h * params["w4"], axis=0, keepdims=True) + params["b4"]
    return out.T                               # (B, 1)


if __name__ == "__main__":
    key = jax.random.PRNGKey(0)
    k_x, k_p, k_x2 = jax.random.split(key, 3)

    dim = 32
    params = init_params(dim, k_p)
    act_dtype = jnp.bfloat16 if _bf16_vector_ok() else jnp.float32

    # Small batch: single tile, single in-kernel chunk.
    B = 16
    x = jax.random.normal(k_x, (B, dim), dtype=jnp.float32)
    out = jax.block_until_ready(dnn3_forward(x, params))
    ref = dnn3_reference(x, params, act_dtype=act_dtype)
    assert out.shape == (B, 1)
    assert jnp.allclose(out, ref, atol=2e-2, rtol=2e-2), \
        "mismatch vs reference (small batch)"

    # Larger batch: exercises batch padding, 2-tile grid, multi-chunk loop.
    B2 = 300
    x2 = jax.random.normal(k_x2, (B2, dim), dtype=jnp.float32)
    out2 = jax.block_until_ready(dnn3_forward(x2, params))
    ref2 = dnn3_reference(x2, params, act_dtype=act_dtype)
    assert out2.shape == (B2, 1)
    assert jnp.allclose(out2, ref2, atol=2e-2, rtol=2e-2), \
        "mismatch vs reference (large batch)"

    print("KERNEL_OK")
</pallas_src>

<mosaic_0001>
module attributes {stable_mosaic.version = 11 : i64} {
  func.func @dnn3_kernel(%arg0: i32, %arg1: memref<128x32xf32, #tpu.memory_space<vmem>>, %arg2: memref<50x32xbf16, #tpu.memory_space<vmem>>, %arg3: memref<50x1xf32, #tpu.memory_space<vmem>>, %arg4: memref<10x50xbf16, #tpu.memory_space<vmem>>, %arg5: memref<10x1xf32, #tpu.memory_space<vmem>>, %arg6: memref<5x10xbf16, #tpu.memory_space<vmem>>, %arg7: memref<5x1xf32, #tpu.memory_space<vmem>>, %arg8: memref<5x1xf32, #tpu.memory_space<vmem>>, %arg9: memref<1x1xf32, #tpu.memory_space<vmem>>, %arg10: memref<1x128xf32, #tpu.memory_space<vmem>>) attributes {dimension_semantics = [#tpu.dimension_semantics<parallel>], iteration_bounds = array<i64: 1>, scalar_prefetch = 0 : i64, scratch_operands = 0 : i64, tpu.core_type = #tpu.core_type<tc>, window_params = [{transform_indices = @transform_0, window_bounds = array<i64: 128, 32>}, {pipeline_mode = #tpu.pipeline_mode<synchronous>, transform_indices = @transform_1, window_bounds = array<i64: 50, 32>}, {pipeline_mode = #tpu.pipeline_mode<synchronous>, transform_indices = @transform_2, window_bounds = array<i64: 50, 1>}, {pipeline_mode = #tpu.pipeline_mode<synchronous>, transform_indices = @transform_3, window_bounds = array<i64: 10, 50>}, {pipeline_mode = #tpu.pipeline_mode<synchronous>, transform_indices = @transform_4, window_bounds = array<i64: 10, 1>}, {pipeline_mode = #tpu.pipeline_mode<synchronous>, transform_indices = @transform_5, window_bounds = array<i64: 5, 10>}, {pipeline_mode = #tpu.pipeline_mode<synchronous>, transform_indices = @transform_6, window_bounds = array<i64: 5, 1>}, {pipeline_mode = #tpu.pipeline_mode<synchronous>, transform_indices = @transform_7, window_bounds = array<i64: 5, 1>}, {pipeline_mode = #tpu.pipeline_mode<synchronous>, transform_indices = @transform_8, window_bounds = array<i64: 1, 1>}, {transform_indices = @transform_9, window_bounds = array<i64: 1, 128>}]} {
    %c0_i32 = arith.constant 0 : i32
    %c128_i32 = arith.constant 128 : i32
    %0 = arith.muli %c0_i32, %c128_i32 : i32
    %1 = tpu.assume_multiple %0, 128 : i32
    %2 = arith.index_cast %1 : i32 to index
    %c0 = arith.constant 0 : index
    %3 = vector.load %arg1[%2, %c0] : memref<128x32xf32, #tpu.memory_space<vmem>>, vector<128x32xf32>
    %4 = arith.truncf %3 : vector<128x32xf32> to vector<128x32xbf16>
    %c0_0 = arith.constant 0 : index
    %c0_1 = arith.constant 0 : index
    %5 = vector.load %arg2[%c0_0, %c0_1] : memref<50x32xbf16, #tpu.memory_space<vmem>>, vector<50x32xbf16>
    %cst = arith.constant dense<0.000000e+00> : vector<50x128xf32>
    %6 = tpu.matmul %5, %4, %cst {dimension_numbers = #tpu.dot_dimension_numbers<[1], [1], [0], [0], [0, 0, 1, 0], [], []>} : vector<50x32xbf16>, vector<128x32xbf16>, vector<50x128xf32> -> vector<50x128xf32>
    %c0_2 = arith.constant 0 : index
    %c0_3 = arith.constant 0 : index
    %7 = vector.load %arg3[%c0_2, %c0_3] : memref<50x1xf32, #tpu.memory_space<vmem>>, vector<50x1xf32>
    %8 = vector.broadcast %7 : vector<50x1xf32> to vector<50x128xf32>
    %9 = arith.addf %6, %8 : vector<50x128xf32>
    %10 = arith.truncf %9 : vector<50x128xf32> to vector<50x128xbf16>
    %11 = math.tanh %10 : vector<50x128xbf16>
    %c0_4 = arith.constant 0 : index
    %c0_5 = arith.constant 0 : index
    %12 = vector.load %arg4[%c0_4, %c0_5] : memref<10x50xbf16, #tpu.memory_space<vmem>>, vector<10x50xbf16>
    %cst_6 = arith.constant dense<0.000000e+00> : vector<10x128xf32>
    %13 = tpu.matmul %12, %11, %cst_6 {dimension_numbers = #tpu.dot_dimension_numbers<[1], [0], [0], [1], [0, 0, 1, 1], [], []>} : vector<10x50xbf16>, vector<50x128xbf16>, vector<10x128xf32> -> vector<10x128xf32>
    %c0_7 = arith.constant 0 : index
    %c0_8 = arith.constant 0 : index
    %14 = vector.load %arg5[%c0_7, %c0_8] : memref<10x1xf32, #tpu.memory_space<vmem>>, vector<10x1xf32>
    %15 = vector.broadcast %14 : vector<10x1xf32> to vector<10x128xf32>
    %16 = arith.addf %13, %15 : vector<10x128xf32>
    %17 = arith.truncf %16 : vector<10x128xf32> to vector<10x128xbf16>
    %18 = math.tanh %17 : vector<10x128xbf16>
    %c0_9 = arith.constant 0 : index
    %c0_10 = arith.constant 0 : index
    %19 = vector.load %arg6[%c0_9, %c0_10] : memref<5x10xbf16, #tpu.memory_space<vmem>>, vector<5x10xbf16>
    %cst_11 = arith.constant dense<0.000000e+00> : vector<5x128xf32>
    %20 = tpu.matmul %19, %18, %cst_11 {dimension_numbers = #tpu.dot_dimension_numbers<[1], [0], [0], [1], [0, 0, 1, 1], [], []>} : vector<5x10xbf16>, vector<10x128xbf16>, vector<5x128xf32> -> vector<5x128xf32>
    %c0_12 = arith.constant 0 : index
    %c0_13 = arith.constant 0 : index
    %21 = vector.load %arg7[%c0_12, %c0_13] : memref<5x1xf32, #tpu.memory_space<vmem>>, vector<5x1xf32>
    %22 = vector.broadcast %21 : vector<5x1xf32> to vector<5x128xf32>
    %23 = arith.addf %20, %22 : vector<5x128xf32>
    %24 = arith.truncf %23 : vector<5x128xf32> to vector<5x128xbf16>
    %25 = math.tanh %24 : vector<5x128xbf16>
    %26 = arith.extf %25 : vector<5x128xbf16> to vector<5x128xf32>
    %c0_14 = arith.constant 0 : index
    %c0_15 = arith.constant 0 : index
    %27 = vector.load %arg8[%c0_14, %c0_15] : memref<5x1xf32, #tpu.memory_space<vmem>>, vector<5x1xf32>
    %28 = vector.broadcast %27 : vector<5x1xf32> to vector<5x128xf32>
    %29 = arith.mulf %26, %28 : vector<5x128xf32>
    %cst_16 = arith.constant dense<0.000000e+00> : vector<128xf32>
    %30 = vector.multi_reduction <add>, %29, %cst_16 [0] : vector<5x128xf32> to vector<128xf32>
    %31 = vector.shape_cast %30 : vector<128xf32> to vector<1x128xf32>
    %c0_17 = arith.constant 0 : index
    %c0_18 = arith.constant 0 : index
    %32 = vector.load %arg9[%c0_17, %c0_18] : memref<1x1xf32, #tpu.memory_space<vmem>>, vector<1x1xf32>
    %33 = vector.broadcast %32 : vector<1x1xf32> to vector<1x128xf32>
    %34 = arith.addf %31, %33 : vector<1x128xf32>
    %c0_19 = arith.constant 0 : index
    %35 = arith.index_cast %1 : i32 to index
    %36 = vector.load %arg10[%c0_19, %35] : memref<1x128xf32, #tpu.memory_space<vmem>>, vector<1x128xf32>
    tpu.vector_store %arg10[%c0_19, %35], %34 {strides = array<i32>} : memref<1x128xf32, #tpu.memory_space<vmem>>, vector<1x128xf32>,
    %c1_i32 = arith.constant 1 : i32
    return
  }
  func.func @transform_0(%arg0: i32) -> (i32, i32) {
    %c0_i32 = arith.constant 0 : i32
    %c0_i32_0 = arith.constant 0 : i32
    return %arg0, %c0_i32 : i32, i32
  }
  func.func @transform_1(%arg0: i32) -> (i32, i32) {
    %c0_i32 = arith.constant 0 : i32
    %c0_i32_0 = arith.constant 0 : i32
    %c0_i32_1 = arith.constant 0 : i32
    return %c0_i32, %c0_i32_0 : i32, i32
  }
  func.func @transform_2(%arg0: i32) -> (i32, i32) {
    %c0_i32 = arith.constant 0 : i32
    %c0_i32_0 = arith.constant 0 : i32
    %c0_i32_1 = arith.constant 0 : i32
    return %c0_i32, %c0_i32_0 : i32, i32
  }
  func.func @transform_3(%arg0: i32) -> (i32, i32) {
    %c0_i32 = arith.constant 0 : i32
    %c0_i32_0 = arith.constant 0 : i32
    %c0_i32_1 = arith.constant 0 : i32
    return %c0_i32, %c0_i32_0 : i32, i32
  }
  func.func @transform_4(%arg0: i32) -> (i32, i32) {
    %c0_i32 = arith.constant 0 : i32
    %c0_i32_0 = arith.constant 0 : i32
    %c0_i32_1 = arith.constant 0 : i32
    return %c0_i32, %c0_i32_0 : i32, i32
  }
  func.func @transform_5(%arg0: i32) -> (i32, i32) {
    %c0_i32 = arith.constant 0 : i32
    %c0_i32_0 = arith.constant 0 : i32
    %c0_i32_1 = arith.constant 0 : i32
    return %c0_i32, %c0_i32_0 : i32, i32
  }
  func.func @transform_6(%arg0: i32) -> (i32, i32) {
    %c0_i32 = arith.constant 0 : i32
    %c0_i32_0 = arith.constant 0 : i32
    %c0_i32_1 = arith.constant 0 : i32
    return %c0_i32, %c0_i32_0 : i32, i32
  }
  func.func @transform_7(%arg0: i32) -> (i32, i32) {
    %c0_i32 = arith.constant 0 : i32
    %c0_i32_0 = arith.constant 0 : i32
    %c0_i32_1 = arith.constant 0 : i32
    return %c0_i32, %c0_i32_0 : i32, i32
  }
  func.func @transform_8(%arg0: i32) -> (i32, i32) {
    %c0_i32 = arith.constant 0 : i32
    %c0_i32_0 = arith.constant 0 : i32
    %c0_i32_1 = arith.constant 0 : i32
    return %c0_i32, %c0_i32_0 : i32, i32
  }
  func.func @transform_9(%arg0: i32) -> (i32, i32) {
    %c0_i32 = arith.constant 0 : i32
    %c0_i32_0 = arith.constant 0 : i32
    return %c0_i32, %arg0 : i32, i32
  }
}

</mosaic_0001>

<bundles_post_ra>
// kernel: tpu_custom_call.1
= control target key start
LH: loop header
LB: loop body
LE: loop exit
PB: predicated region body
PF: predicated region fallthrough
CT: control target
= control target key end

     0   :  { %s723_s0 = inlined_call_operand.vmem [shape: f32[128,32], index: 0, kind: input, shape index: {}]   ;;  %s724_s1 = inlined_call_operand.vmem [shape: bf16[50,32], index: 1, kind: input, shape index: {}]   ;;  %s725_s2 = inlined_call_operand.vmem [shape: f32[50,1], index: 2, kind: input, shape index: {}]   ;;  %s726_s3 = inlined_call_operand.vmem [shape: bf16[10,50], index: 3, kind: input, shape index: {}]   ;;  %s727_s4 = inlined_call_operand.vmem [shape: f32[10,1], index: 4, kind: input, shape index: {}]   ;;  %s728_s5 = inlined_call_operand.vmem [shape: bf16[5,10], index: 5, kind: input, shape index: {}]   ;;  %s729_s6 = inlined_call_operand.vmem [shape: f32[5,1], index: 6, kind: input, shape index: {}]   ;;  %s730_s7 = inlined_call_operand.vmem [shape: f32[5,1], index: 7, kind: input, shape index: {}]   ;;  %s731_s8 = inlined_call_operand.<no memory space> [shape: f32[1,1], index: 8, kind: input, shape index: {}]   ;;  %s732_s9 = inlined_call_operand.hbm [shape: f32[1,128], index: 9, kind: output, shape index: {}]  }
   0x1   :  { %v14_v0 = vstv %s731_s8 }
   0x2   :  { %15 = vst [vmem:[#allocation2] sm:$0x1] %v14_v0 }
   0x3   :  { %v36_v1 = vld [vmem:[%s723_s0] sm:$0xff]  ;;  %v37_v2 = vld [vmem:[%s723_s0 + $0x8] sm:$0xff]  ;;  %vm127_vm0 = vcmask 261120   ;;  %v38_v3 = vld [vmem:[%s723_s0 + $0x10] sm:$0xff]  ;;  %v531_v6 = vmov 0  }
   0x4   :  { %v52_v4 = vpack.c.bf16 %v37_v2, %v36_v1  ;;  %v39_v5 = vld [vmem:[%s723_s0 + $0x18] sm:$0xff]  ;;  %488 = vset.pattern.permute.xlu0 %v531_v6  ;;  %489 = vset.pattern.permute.xlu1 %v531_v6  ;;  %v40_v9 = vld [vmem:[%s723_s0 + $0x20] sm:$0xff]  ;;  %v41_v10 = vld [vmem:[%s723_s0 + $0x28] sm:$0xff] }
   0x5   :  { %v53_v7 = vpack.c.bf16 %v39_v5, %v38_v3  ;;  %v490_v11 = vld [vmem:[%s724_s1] sm:$0xff]   ;;  %v54_v14 = vpack.c.bf16 %v41_v10, %v40_v9  ;;  %v69_v15 = vld [vmem:[%s725_s2 + $0x10] sm:$0xff]  ;;  %v68_v16 = vld [vmem:[%s725_s2 + $0x8] sm:$0xff] }
   0x6   :  { %476 = vmatprep.subr.msk.bf16.mxu0 %vm127_vm0, %v52_v4  ;;  %v141_v8 = vsel %vm127_vm0, %v52_v4, 0  ;;  %450 = vmatprep.mubr.msk.bf16.mxu0 %vm127_vm0, %v490_v11  ;;  %v67_v12 = vld [vmem:[%s725_s2] sm:$0xff]  ;;  %v70_v17 = vld [vmem:[%s725_s2 + $0x18] sm:$0xff] }
   0x7   :  { %435 = vmatpush3.bf16.xpose.msra.mxu0 %v141_v8  ;;  %v144_v13 = vsel %vm127_vm0, %v53_v7, 0  ;;  %76 = vperm.xlu0 %488, %v67_v12  }
   0x8   :  { %477 = vmatprep.subr.msk.bf16.mxu0 %vm127_vm0, %v53_v7  ;;  %86 = vperm.xlu1 %489, %v69_v15  }
   0xb   :  { %81 = vperm.xlu0 %488, %v68_v16  }
   0xf   :  { %437 = vmatpush3.bf16.xpose.msra.mxu0 %v144_v13 }
  0x10   :  { %478 = vmatprep.subr.msk.bf16.mxu0 %vm127_vm0, %v54_v14 }
  0x11   :  { %16 = vsyncpa [#allocation4], 0  ;;  %v42_v18 = vld [vmem:[%s723_s0 + $0x30] sm:$0xff]  ;;  %v43_v19 = vld [vmem:[%s723_s0 + $0x38] sm:$0xff]  ;;  %91 = vperm.xlu1 %489, %v70_v17   ;;  %v147_v22 = vsel %vm127_vm0, %v54_v14, 0  ;;  %v532_v50 = vmov 0.0  }
  0x12   :  { %v71_v20 = vld [vmem:[%s725_s2 + $0x20] sm:$0xff]  ;;  %v72_v21 = vld [vmem:[%s725_s2 + $0x28] sm:$0xff]  ;;  %v55_v23 = vpack.c.bf16 %v43_v19, %v42_v18  ;;  %v73_v24 = vld [vmem:[%s725_s2 + $0x30] sm:$0x3]  ;;  %458 = vmatprep.subr.bf16.mxu1 %v532_v50  ;;  %vm533_vm1 = vmmov 0   ;;  %vm259_vm2 = vcmask 1040384  }
  0x13   :  { %96 = vperm.xlu0 %488, %v71_v20   ;;  %v238_v25 = vld [vmem:[%s727_s4] sm:$0xff]  ;;  %v45_v27 = vld [vmem:[%s723_s0 + $0x48] sm:$0xff]  ;;  %v46_v34 = vld [vmem:[%s723_s0 + $0x50] sm:$0xff]  ;;  %466 = vmatprep.mubr.msk.bf16.mxu1 %vm533_vm1, %v532_v50  ;;  %vm255_vm3 = vcmask 408576   ;;  %vm317_vm4 = vcmask 1044480   ;;  %vm313_vm5 = vcmask 80896  }
  0x14   :  { %v44_v26 = vld [vmem:[%s723_s0 + $0x40] sm:$0xff]  ;;  %v239_v28 = vld [vmem:[%s727_s4 + $0x8] sm:$0x3]  ;;  %v150_v30 = vsel %vm127_vm0, %v55_v23, 0  ;;  %v47_v35 = vld [vmem:[%s723_s0 + $0x58] sm:$0xff] }
  0x15   :  { %101 = vperm.xlu1 %489, %v72_v21   ;;  %v307_v29 = vld [vmem:[%s729_s6] sm:$0x1f]  ;;  %v56_v31 = vpack.c.bf16 %v45_v27, %v44_v26  ;;  %v57_v37 = vpack.c.bf16 %v47_v35, %v46_v34  ;;  %v49_v39 = vld [vmem:[%s723_s0 + $0x68] sm:$0xff]  ;;  %v50_v42 = vld [vmem:[%s723_s0 + $0x70] sm:$0xff] }
  0x16   :  { %v364_v32 = vld [vmem:[%s730_s7] sm:$0x1f]  ;;  %v51_v43 = vld [vmem:[%s723_s0 + $0x78] sm:$0xff]  ;;  %v491_v47 = vld [vmem:[%s724_s1 + $0x8] sm:$0xff]  }
  0x17   :  { %439 = vmatpush3.bf16.xpose.msra.mxu0 %v147_v22  ;;  %106 = vperm.xlu0 %488, %v73_v24   ;;  %v378_v33 = vld [vmem:[#allocation2] sm:$0x1]  ;;  %v153_v36 = vsel %vm127_vm0, %v56_v31, 0  ;;  %v156_v40 = vsel %vm127_vm0, %v57_v37, 0  ;;  %v59_v45 = vpack.c.bf16 %v51_v43, %v50_v42  ;;  %v492_v48 = vld [vmem:[%s724_s1 + $0x10] sm:$0xff]   ;;  %v384_v42 = vlaneseq }
  0x18   :  { %479 = vmatprep.subr.msk.bf16.mxu0 %vm127_vm0, %v55_v23  ;;  %v48_v38 = vld [vmem:[%s723_s0 + $0x60] sm:$0xff]  ;;  %v493_v49 = vld [vmem:[%s724_s1 + $0x18] ss:$0 sps:$4 sm:$0x11]  }
  0x19   :  { %242 = vperm.xlu1 %489, %v238_v25   ;;  %v58_v41 = vpack.c.bf16 %v49_v39, %v48_v38  ;;  %v162_v46 = vsel %vm127_vm0, %v59_v45, 0  ;;  %v494_v18 = vld [vmem:[%s726_s3] sm:$0x1f]  }
  0x1b   :  { %247 = vperm.xlu0 %488, %v239_v28   ;;  %v159_v44 = vsel %vm127_vm0, %v58_v41, 0 }
  0x1d   :  { %310 = vperm.xlu1 %489, %v307_v29  }
  0x1f   :  { %441 = vmatpush3.bf16.xpose.msra.mxu0 %v150_v30  ;;  %367 = vperm.xlu0 %488, %v364_v32   ;;  %v306_v30 = vld [vmem:[%s728_s5] sm:$0x7]  ;;  %s534_s5 = smov [#allocation3]  }
  0x20   :  { %480 = vmatprep.subr.msk.bf16.mxu0 %vm127_vm0, %v56_v31  ;;  %s396_s25 = sshll.u32 %s534_s5, 4  ;;  %s397_s25 = int_to_ptr.vmem [resolvable:$true] %s396_s25 }
  0x21   :  { %381 = vperm.xlu1 %489, %v378_v33   ;;  %s507_s26 = scalar_lea.vmem %s397_s25, 16  ;;  %s511_s27 = scalar_lea.vmem %s397_s25, 32 }
  0x22   :  { %p508_p0 = scmp.ne.s32.totalorder %s397_s25, %s507_s26  ;;  %p512_p1 = scmp.lt.s32.totalorder %s397_s25, %s397_s25 }
  0x23   :  { %p513_p2 = scmp.lt.s32.totalorder %s511_s27, %s507_s26 }
  0x25   :  { %p514_p3 = por %p513_p2, %p512_p1 }
  0x27   :  { %443 = vmatpush3.bf16.xpose.msra.mxu0 %v153_v36  ;;  %p515_p4 = pnand %p514_p3, %p508_p0 }
  0x28   :  { %481 = vmatprep.subr.msk.bf16.mxu0 %vm127_vm0, %v57_v37 }
  0x2f   :  { %445 = vmatpush3.bf16.xpose.msra.mxu0 %v156_v40 }
  0x30   :  { %482 = vmatprep.subr.msk.bf16.mxu0 %vm127_vm0, %v58_v41 }
  0x37   :  { %447 = vmatpush3.bf16.xpose.msra.mxu0 %v159_v44 }
  0x38   :  { %483 = vmatprep.subr.msk.bf16.mxu0 %vm127_vm0, %v59_v45  ;;  %v385_v45 = vshrl.u32 %v384_v42, 7 }
  0x3f   :  { %449 = vmatpush3.bf16.xpose.msra.mxu0 %v162_v46 }
  0x46   :  { %451 = vmatmul.mubr.msk.bf16.vlgmr.msra.gmra.mrb[0].mxu0 %vm127_vm0, %v491_v47 }
  0x47   :  { %454 = vmatprep.mubr.msk.bf16.mxu0 %vm127_vm0, %v492_v48  ;;  %v386_v48 = vsub.s32 0, %v385_v45 }
  0x4e   :  { %455 = vmatmul.mubr.msk.bf16.gmra.mrb[4].mxu0 %vm127_vm0, %v493_v49 }
  0x86   :  { %v77_v51 = vpop.permute.xlu0 %76 }
  0x87   :  { %v87_v52 = vpop.permute.xlu1 %86 }
  0x8a   :  { %v82_v53 = vpop.permute.xlu0 %81 }
  0x90   :  { %v92_v55 = vpop.permute.xlu1 %91 }
  0x92   :  { %v97_v57 = vpop.permute.xlu0 %96 }
  0x94   :  { %v102_v7 = vpop.permute.xlu1 %101 }
  0x96   :  { %v107_v2 = vpop.permute.xlu0 %106 }
  0x98   :  { %v243_v20 = vpop.permute.xlu1 %242 }
  0x9a   :  { %v248_v22 = vpop.permute.xlu0 %247 }
  0x9c   :  { %v311_v31 = vpop.permute.xlu1 %310 }
  0x9e   :  { %v368_v40 = vpop.permute.xlu0 %367 }
 0x119   :  { %v452_v54 = vpop.f32.mrb[0].mxu0 }
 0x11a   :  { %v198_v56 = vpop.f32.mrb[1].mxu0  ;;  %v207_v59 = vadd.f32 %v452_v54, %v87_v52 }
 0x11b   :  { %v453_v58 = vpop.f32.mrb[2].mxu0  ;;  %v199_v62 = vadd.f32 %v198_v56, %v77_v51 }
 0x11c   :  { %v210_v60 = vadd.f32 %v453_v58, %v92_v55  ;;  %v201_v61 = vpop.f32.mrb[3].mxu0 }
 0x11d   :  { %v202_v63 = vadd.f32 %v201_v61, %v82_v53 }
 0x11e   :  { %v229_v0 = vpack.c.bf16 %v210_v60, %v207_v59 }
 0x11f   :  { %v228_v1 = vpack.c.bf16 %v202_v63, %v199_v62 }
 0x121   :  { %495 = vtanh.bf16 %v228_v1  ;;  %v456_v3 = vpop.f32.mrb[4].mxu0 }
 0x122   :  { %v223_v4 = vadd.f32 %v456_v3, %v107_v2  ;;  %v214_v5 = vpop.f32.mrb[5].mxu0  ;;  %497 = vtanh.bf16 %v229_v0 }
 0x123   :  { %v457_v6 = vpop.f32.mrb[6].mxu0  ;;  %v215_v9 = vadd.f32 %v214_v5, %v97_v57 }
 0x124   :  { %v217_v8 = vpop.f32.mrb[7].mxu0  ;;  %v231_v11 = vpack.c.bf16 %v223_v4, %v223_v4 }
 0x125   :  { %v218_v10 = vadd.f32 %v217_v8, %v102_v7 }
 0x127   :  { %v230_v12 = vpack.c.bf16 %v218_v10, %v215_v9 }
 0x129   :  { %499 = vtanh.bf16 %v230_v12 }
 0x12a   :  { %501 = vtanh.bf16 %v231_v11 }
 0x12c   :  { %v496_v13 = vpop.eup %495 }
 0x12d   :  { %459 = vmatpush3.bf16.msra.mxu1 %v496_v13  ;;  %v498_v14 = vpop.eup %497 }
 0x12e   :  { %460 = vmatprep.subr.bf16.mxu1 %v532_v50 }
 0x131   :  { %461 = vmatpush3.bf16.msra.mxu1 %v498_v14 }
 0x132   :  { %462 = vmatprep.subr.bf16.mxu1 %v532_v50 }
 0x134   :  { %v500_v15 = vpop.eup %499 }
 0x135   :  { %v502_v16 = vpop.eup %501  ;;  %463 = vmatpush3.bf16.msra.mxu1 %v500_v15 }
 0x136   :  { %464 = vmatprep.subr.bf16.mxu1 %v532_v50  ;;  %v261_v17 = vsel %vm259_vm2, %v502_v16, 0 }
 0x139   :  { %465 = vmatpush3.bf16.msra.mxu1 %v261_v17 }
 0x13a   :  { %470 = vmatprep.subr.bf16.mxu1 %v532_v50 }
 0x13c   :  { %467 = vmatmul.mubr.msk.bf16.vlgmr.msra.gmra.mrb[0].mxu1 %vm255_vm3, %v494_v18 }
 0x13d   :  { %472 = vmatprep.mubr.msk.bf16.mxu1 %vm533_vm1, %v532_v50  ;;  %v382_v50 = vpop.permute.xlu1 %381 }
 0x13e   :  { %v387_v52 = vrot.slane %v382_v50, %v386_v48 }
 0x20f   :  { %v297_v19 = vpop.f32.mrb[0].mxu1 }
 0x210   :  { %v468_v21 = vpop.f32.mrb[1].mxu1  ;;  %v298_v24 = vadd.f32 %v297_v19, %v243_v20 }
 0x211   :  { %v300_v23 = vpop.f32.mrb[2].mxu1 }
 0x212   :  { %v301_v25 = vadd.f32 %v300_v23, %v248_v22  ;;  %v469_v26 = vpop.f32.mrb[3].mxu1 }
 0x214   :  { %v304_v27 = vpack.c.bf16 %v301_v25, %v298_v24 }
 0x216   :  { %503 = vtanh.bf16 %v304_v27 }
 0x221   :  { %v504_v28 = vpop.eup %503 }
 0x222   :  { %v319_v29 = vsel %vm317_vm4, %v504_v28, 0 }
 0x223   :  { %471 = vmatpush3.bf16.msra.mxu1 %v319_v29 }
 0x226   :  { %473 = vmatmul.mubr.msk.bf16.vlgmr.msra.gmra.mrb[4].mxu1 %vm313_vm5, %v306_v30 }
 0x2f9   :  { %v355_v32 = vpop.f32.mrb[4].mxu1 }
 0x2fa   :  { %v356_v33 = vadd.f32 %v355_v32, %v311_v31  ;;  %v474_v34 = vpop.f32.mrb[5].mxu1 }
 0x2fb   :  { %v358_v35 = vpop.f32.mrb[6].mxu1 }
 0x2fc   :  { %v361_v36 = vpack.c.bf16 %v356_v33, %v356_v33  ;;  %v475_v37 = vpop.f32.mrb[7].mxu1 }
 0x2fe   :  { %505 = vtanh.bf16 %v361_v36 }
 0x309   :  { %v506_v38 = vpop.eup %505 }
 0x30a   :  { %v363_v39 = vunpack.c.l.bf16 %v506_v38 }
 0x30c   :  { %v370_v41 = vmul.f32 %v368_v40, %v363_v39 }
 0x30e   :  { %v371_v43 = vsel %vm317_vm4, %v370_v41, 0.0 }
 0x30f   :  { %v372_v44 = vrot.slane %v371_v43, 4 }
 0x311   :  { %v373_v46 = vadd.f32 %v372_v44, %v371_v43 }
 0x313   :  { %v374_v47 = vrot.slane %v373_v46, 2 }
 0x315   :  { %v375_v49 = vadd.f32 %v374_v47, %v373_v46 }
 0x317   :  { %v376_v51 = vrot.slane %v375_v49, 1 }
 0x319   :  { %v377_v53 = vadd.f32 %v376_v51, %v375_v49 }
 0x31b   :  { %v388_v54 = vadd.f32 %v387_v52, %v377_v53 }
 0x31d   :  { %389 = vst [vmem:[#allocation3] sm:$0x1] %v388_v54 }
 0x31e   :  { %518 = shalt.err (!%p515_p4)
}
 0x31f   :  { %s519_s29 = scalar_lea.hbm %s732_s9, 16 }
 0x320   :  { %p520_p5 = scmp.ne.s32.totalorder %s732_s9, %s519_s29  ;;  %p523_p6 = scmp.lt.u32.totalorder %s519_s29, %s732_s9 }
 0x322   :  { %p525_p7 = pnand %p523_p6, %p520_p5 }
 0x324   :  { %528 = shalt.err (!%p525_p7)
}
 0x325   :  { %399 = dma.vmem_to_hbm [thread:$0]  %s397_s25, 16, %s732_s9, [#allocation4]  }
 0x326   :  { %529 = dma.done.wait [#allocation4], 16  }
 0x327   :  { %530 = vsyncadd [#allocation4], 4294967280 }
 0x328   :  { %403 = vsyncpa [#allocation4], 1 }

</bundles_post_ra>
